<compile_context>
chip_gen: v7x
topology: tpu7x:2x2x1
jax: 0.10.0
libtpu: 0.0.40
codegen_flags: <defaults>
</compile_context>

<pallas_src>
import functools

import jax
import jax.numpy as jnp
import numpy as np
from jax.experimental import pallas as pl
from jax.experimental.pallas import tpu as pltpu


# ------------------------------- kernels -------------------------------------

def _conv3x3_stats(act, wbig_ref, conv_ref, stats_ref, lhs_ref, *, imgs, h):
    """3x3 conv (pad=1, stride=1) of `imgs` lane-dense images + BN stat accum.

    act      : (imgs*h, W*Cin) f32 value (already loaded / computed in VMEM)
    wbig_ref : (3*W*Cin, W*Cout) bf16 banded weights, kh taps stacked along K
    conv_ref : (imgs*h, W*Cout) f32 conv output block
    stats_ref: (8, W*Cout) f32 resident accumulator (row 0 = sum, row 1 = sumsq)
    lhs_ref  : (imgs*h, 3*W*Cin) f32 scratch holding the kh-shifted conv LHS
    """
    wc_in = act.shape[1]
    wc_out = conv_ref.shape[1]
    step = pl.program_id(0)

    # The zero boundary rows of the shifted LHS never change across the grid:
    # write them once (scratch persists across grid iterations).
    @pl.when(step == 0)
    def _():
        zrow = jnp.zeros((1, wc_in), jnp.float32)
        for b in range(imgs):
            lhs_ref[b * h:b * h + 1, 0:wc_in] = zrow              # kh=0, h=0
            lhs_ref[(b + 1) * h - 1:(b + 1) * h, 2 * wc_in:3 * wc_in] = zrow  # kh=2, h=H-1

    # kh = 1 (center tap): aligned full-block copy for all images at once.
    lhs_ref[:, wc_in:2 * wc_in] = act
    # kh = 0 / kh = 2: per-image H-shifted copies.  The W-side shift and the
    # W-side zero padding live inside the banded weight, so no W work is done.
    for b in range(imgs):
        lhs_ref[b * h + 1:(b + 1) * h, 0:wc_in] = act[b * h:(b + 1) * h - 1, :]
        lhs_ref[b * h:(b + 1) * h - 1, 2 * wc_in:3 * wc_in] = act[b * h + 1:(b + 1) * h, :]

    # Single fat MXU matmul: (imgs*h, 3*W*Cin) @ (3*W*Cin, W*Cout),
    # bf16 operands, f32 accumulation.
    acc = jnp.dot(lhs_ref[...].astype(jnp.bfloat16), wbig_ref[...],
                  preferred_element_type=jnp.float32)
    conv_ref[...] = acc

    # BN statistics per (w, c) lane, accumulated across the whole grid in the
    # resident stats block.  Built as one full (8, W*Cout) tile -> one
    # unmasked full-tile store per step.
    stats_tile = jnp.concatenate(
        [jnp.sum(acc, axis=0, keepdims=True),
         jnp.sum(acc * acc, axis=0, keepdims=True),
         jnp.zeros((6, wc_out), jnp.float32)], axis=0)

    @pl.when(step == 0)
    def _():
        stats_ref[...] = jnp.zeros_like(stats_ref)

    stats_ref[...] += stats_tile


def _conv1_kernel(x_ref, wbig_ref, conv_ref, stats_ref, lhs_ref, *, imgs, h):
    """conv1 of one image-group + BN statistics."""
    _conv3x3_stats(x_ref[...], wbig_ref, conv_ref, stats_ref, lhs_ref,
                   imgs=imgs, h=h)


def _bn_relu_conv2_kernel(y_ref, scale_ref, shift_ref, wbig_ref,
                          conv_ref, stats_ref, lhs_ref, *, imgs, h):
    """Fused: bn1 affine + relu on conv1 output, then conv2 + BN statistics."""
    act = jnp.maximum(y_ref[...] * scale_ref[...] + shift_ref[...], 0.0)
    _conv3x3_stats(act, wbig_ref, conv_ref, stats_ref, lhs_ref, imgs=imgs, h=h)


def _bn_add_relu_kernel(y_ref, scale_ref, shift_ref, res_ref, out_ref):
    """Final apply: bn2 affine + identity residual + relu (lane-dense VPU work)."""
    out_ref[...] = jnp.maximum(
        y_ref[...] * scale_ref[...] + shift_ref[...] + res_ref[...], 0.0)


# --------------------------- pallas_call wrappers -----------------------------

_VMEM_LIMIT = 32 * 1024 * 1024   # fits comfortably on v5e/v6e (128 MiB) and v7x (64 MiB)


def _conv_pass(kernel_fn, operands, in_specs, *, steps, rows, wc_in, wc_out):
    """Grid over image-groups; emits (lane-dense conv output, accumulated BN stats)."""
    return pl.pallas_call(
        kernel_fn,
        grid_spec=pltpu.PrefetchScalarGridSpec(
            num_scalar_prefetch=0,
            grid=(steps,),
            in_specs=in_specs,
            out_specs=[
                pl.BlockSpec((rows, wc_out), lambda g: (g, 0)),
                # Resident accumulator block: constant index -> written back once.
                pl.BlockSpec((8, wc_out), lambda g: (0, 0)),
            ],
            scratch_shapes=[pltpu.VMEM((rows, 3 * wc_in), jnp.float32)],
        ),
        out_shape=(
            jax.ShapeDtypeStruct((steps * rows, wc_out), jnp.float32),
            jax.ShapeDtypeStruct((8, wc_out), jnp.float32),
        ),
        compiler_params=pltpu.CompilerParams(
            # stats accumulate across the grid -> this axis must be "arbitrary"
            dimension_semantics=("arbitrary",),
            vmem_limit_bytes=_VMEM_LIMIT,
        ),
    )(*operands)


def _conv1_pass(x2d, wbig, *, steps, rows, imgs, h):
    wc_in = x2d.shape[1]
    wc_out = wbig.shape[1]
    in_specs = [
        pl.BlockSpec((rows, wc_in), lambda g: (g, 0)),
        pl.BlockSpec(wbig.shape, lambda g: (0, 0)),        # resident weights
    ]
    return _conv_pass(functools.partial(_conv1_kernel, imgs=imgs, h=h),
                      (x2d, wbig), in_specs,
                      steps=steps, rows=rows, wc_in=wc_in, wc_out=wc_out)


def _bn_relu_conv2_pass(y2d, scale, shift, wbig, *, steps, rows, imgs, h):
    wc_in = y2d.shape[1]
    wc_out = wbig.shape[1]
    in_specs = [
        pl.BlockSpec((rows, wc_in), lambda g: (g, 0)),
        pl.BlockSpec((1, wc_in), lambda g: (0, 0)),
        pl.BlockSpec((1, wc_in), lambda g: (0, 0)),
        pl.BlockSpec(wbig.shape, lambda g: (0, 0)),        # resident weights
    ]
    return _conv_pass(functools.partial(_bn_relu_conv2_kernel, imgs=imgs, h=h),
                      (y2d, scale, shift, wbig), in_specs,
                      steps=steps, rows=rows, wc_in=wc_in, wc_out=wc_out)


def _bn_add_relu(y2d, scale, shift, res2d, *, steps, rows):
    wc = y2d.shape[1]
    return pl.pallas_call(
        _bn_add_relu_kernel,
        grid_spec=pltpu.PrefetchScalarGridSpec(
            num_scalar_prefetch=0,
            grid=(steps,),
            in_specs=[
                pl.BlockSpec((rows, wc), lambda g: (g, 0)),
                pl.BlockSpec((1, wc), lambda g: (0, 0)),
                pl.BlockSpec((1, wc), lambda g: (0, 0)),
                pl.BlockSpec((rows, wc), lambda g: (g, 0)),
            ],
            out_specs=pl.BlockSpec((rows, wc), lambda g: (g, 0)),
        ),
        out_shape=jax.ShapeDtypeStruct(y2d.shape, jnp.float32),
        compiler_params=pltpu.CompilerParams(
            dimension_semantics=("parallel",),             # no accumulation here
            vmem_limit_bytes=_VMEM_LIMIT,
        ),
    )(y2d, scale, shift, res2d)


# ------------------------------ wrapper glue ----------------------------------

def _choose_images_per_step(n, h, max_rows=512):
    """Largest divisor B of n with >= 2 grid steps (when n >= 2) and B*H <= 512."""
    best = 1
    for b in range(1, n + 1):
        if n % b:
            continue
        if n >= 2 and n // b < 2:
            continue
        if b * h > max_rows:
            continue
        best = b
    return best


def _banded_weights_kcat(w_oihw, width):
    """(Cout, Cin, 3, 3) OIHW weights -> (3*W*Cin, W*Cout) bf16 banded matrix.

    Row block kh, entry [w'*Cin + ci, w*Cout + co] = w[co, ci, kh, w'-w+1] for
    |w'-w| <= 1, so
        conv_out[h, w*Cout+co] = LHS[h, :] @ Wbig
    where LHS[h, kh*W*Cin + j] = xpad_H[h+kh, j].  The W-side zero padding is
    expressed by the clipped band.  Built once per call (tiny at W*C == 128).
    """
    c_out, c_in = w_oihw.shape[0], w_oihw.shape[1]
    mats = []
    for kh in range(3):
        m = jnp.zeros((width * c_in, width * c_out), jnp.float32)
        for kw in range(3):
            tap = jnp.transpose(w_oihw[:, :, kh, kw], (1, 0))        # (Cin, Cout)
            shift = jnp.eye(width, k=-(kw - 1), dtype=jnp.float32)   # w' == w + (kw-1)
            m = m + jnp.kron(shift, tap)
        mats.append(m)
    return jnp.concatenate(mats, axis=0).astype(jnp.bfloat16)


def _bn_scale_shift(stats, gamma, beta, count, width, channels, eps=1e-5):
    """Finalize training-mode BN from the accumulated (8, W*C) sum/sumsq tile."""
    s = jnp.sum(stats[0].reshape(width, channels), axis=0)           # (C,)
    q = jnp.sum(stats[1].reshape(width, channels), axis=0)
    mean = s / count
    var = jnp.maximum(q / count - mean * mean, 0.0)
    scale = gamma * jax.lax.rsqrt(var + eps)
    shift = beta - mean * scale
    # Tile per-channel vectors across W so they line up with the (.., W*C) lanes.
    return (jnp.tile(scale, width).reshape(1, width * channels),
            jnp.tile(shift, width).reshape(1, width * channels))


@jax.jit
def basic_block_forward(x_nchw, w1_oihw, gamma1, beta1, w2_oihw, gamma2, beta2):
    """BasicBlock forward (stride=1, downsample=None), training-mode BatchNorm.

    x_nchw : (N, C, H, W) f32;  w*_oihw : (C, C, 3, 3);  gamma/beta : (C,).
    Assumes H is a multiple of 8 (true for the test and typical ResNet stages).
    """
    n, c, h, w = x_nchw.shape
    c1 = w1_oihw.shape[0]
    c2 = w2_oihw.shape[0]
    assert c1 == c and c2 == c, "identity residual requires matching channels"
    assert h % 8 == 0, "H must be a multiple of 8 for lane-dense tiling"

    imgs = _choose_images_per_step(n, h)
    steps = n // imgs
    rows = imgs * h

    # NCHW -> lane-dense (N*H, W*C).  (Still an XLA transpose copy; see TODO.)
    x2d = jnp.transpose(x_nchw, (0, 2, 3, 1)).reshape(n * h, w * c)

    wb1 = _banded_weights_kcat(w1_oihw, w)      # (3*W*C,  W*C1) bf16
    wb2 = _banded_weights_kcat(w2_oihw, w)      # (3*W*C1, W*C2) bf16

    # stage 1: conv1 (+ BN statistics accumulated in the same pass)
    conv1, st1 = _conv1_pass(x2d, wb1, steps=steps, rows=rows, imgs=imgs, h=h)
    scale1, shift1 = _bn_scale_shift(st1, gamma1, beta1, n * h * w, w, c1)

    # stage 2: bn1+relu fused with conv2 (+ BN statistics)
    conv2, st2 = _bn_relu_conv2_pass(conv1, scale1, shift1, wb2,
                                     steps=steps, rows=rows, imgs=imgs, h=h)
    scale2, shift2 = _bn_scale_shift(st2, gamma2, beta2, n * h * w, w, c2)

    # bn2 + identity residual + relu
    out2d = _bn_add_relu(conv2, scale2, shift2, x2d, steps=steps, rows=rows)

    return jnp.transpose(out2d.reshape(n, h, w, c2), (0, 3, 1, 2))


# ---- pure-JAX reference (NCHW, matching PyTorch training-mode semantics) -----

def _reference(x, w1, g1, b1, w2, g2, b2):
    def conv(x, wt):
        return jax.lax.conv_general_dilated(
            x, wt, window_strides=(1, 1), padding=((1, 1), (1, 1)),
            dimension_numbers=("NCHW", "OIHW", "NCHW"))

    def bn(x, g, b):
        mean = jnp.mean(x, axis=(0, 2, 3), keepdims=True)
        var = jnp.mean((x - mean) ** 2, axis=(0, 2, 3), keepdims=True)
        xhat = (x - mean) * jax.lax.rsqrt(var + 1e-5)
        return xhat * g.reshape(1, -1, 1, 1) + b.reshape(1, -1, 1, 1)

    out = jax.nn.relu(bn(conv(x, w1), g1, b1))
    out = bn(conv(out, w2), g2, b2) + x
    return jax.nn.relu(out)


if __name__ == "__main__":
    key = jax.random.PRNGKey(0)
    k1, k2, kx = jax.random.split(key, 3)

    # in_channel == out_channel, stride=1; W * C == 128 -> fully lane-dense tiles.
    N, C, H, W = 2, 8, 16, 16
    x = jax.random.normal(kx, (N, C, H, W), jnp.float32)

    w1 = jax.random.normal(k1, (C, C, 3, 3), jnp.float32) * 0.1
    w2 = jax.random.normal(k2, (C, C, 3, 3), jnp.float32) * 0.1
    g1 = jnp.ones((C,), jnp.float32); b1 = jnp.zeros((C,), jnp.float32)
    g2 = jnp.ones((C,), jnp.float32); b2 = jnp.zeros((C,), jnp.float32)

    out = jax.block_until_ready(
        basic_block_forward(x, w1, g1, b1, w2, g2, b2))

    ref = _reference(x, w1, g1, b1, w2, g2, b2)
    assert out.shape == ref.shape == (N, C, H, W)
    # bf16 MXU operands (f32 accumulation) -> tolerance relaxed vs. pure f32.
    np.testing.assert_allclose(np.asarray(out), np.asarray(ref),
                               rtol=2e-2, atol=2e-2)

    print("KERNEL_OK")
</pallas_src>

<mosaic_0001>
module attributes {stable_mosaic.version = 11 : i64} {
  func.func @_conv1_kernel(%arg0: i32, %arg1: memref<16x128xf32, #tpu.memory_space<vmem>>, %arg2: memref<384x128xbf16, #tpu.memory_space<vmem>>, %arg3: memref<16x128xf32, #tpu.memory_space<vmem>>, %arg4: memref<8x128xf32, #tpu.memory_space<vmem>>, %arg5: memref<16x384xf32, #tpu.memory_space<vmem>>) attributes {dimension_semantics = [#tpu.dimension_semantics<arbitrary>], iteration_bounds = array<i64: 2>, scalar_prefetch = 0 : i64, scratch_operands = 1 : i64, tpu.core_type = #tpu.core_type<tc>, window_params = [{transform_indices = @transform_0, window_bounds = array<i64: 16, 128>}, {pipeline_mode = #tpu.pipeline_mode<synchronous>, transform_indices = @transform_1, window_bounds = array<i64: 384, 128>}, {transform_indices = @transform_2, window_bounds = array<i64: 16, 128>}, {pipeline_mode = #tpu.pipeline_mode<synchronous>, transform_indices = @transform_3, window_bounds = array<i64: 8, 128>}]} {
    %c0 = arith.constant 0 : index
    %c0_0 = arith.constant 0 : index
    %0 = vector.load %arg1[%c0, %c0_0] : memref<16x128xf32, #tpu.memory_space<vmem>>, vector<16x128xf32>
    %c0_i32 = arith.constant 0 : i32
    %1 = arith.cmpi eq, %arg0, %c0_i32 : i32
    %2 = arith.extui %1 : i1 to i32
    %c0_i32_1 = arith.constant 0 : i32
    %3 = arith.cmpi ne, %2, %c0_i32_1 : i32
    scf.if %3 {
      %cst_20 = arith.constant 0.000000e+00 : f32
      %27 = vector.broadcast %cst_20 : f32 to vector<1x128xf32>
      %c0_21 = arith.constant 0 : index
      %c0_22 = arith.constant 0 : index
      %28 = vector.load %arg5[%c0_21, %c0_22] : memref<16x384xf32, #tpu.memory_space<vmem>>, vector<1x128xf32>
      tpu.vector_store %arg5[%c0_21, %c0_22], %27 {strides = array<i32>} : memref<16x384xf32, #tpu.memory_space<vmem>>, vector<1x128xf32>,
      %c15 = arith.constant 15 : index
      %c256_23 = arith.constant 256 : index
      %29 = vector.load %arg5[%c15, %c256_23] : memref<16x384xf32, #tpu.memory_space<vmem>>, vector<1x128xf32>
      tpu.vector_store %arg5[%c15, %c256_23], %27 {strides = array<i32>} : memref<16x384xf32, #tpu.memory_space<vmem>>, vector<1x128xf32>,
    } else {
    }
    %c0_2 = arith.constant 0 : index
    %c128 = arith.constant 128 : index
    %4 = vector.load %arg5[%c0_2, %c128] : memref<16x384xf32, #tpu.memory_space<vmem>>, vector<16x128xf32>
    tpu.vector_store %arg5[%c0_2, %c128], %0 {strides = array<i32>} : memref<16x384xf32, #tpu.memory_space<vmem>>, vector<16x128xf32>,
    %5 = vector.extract_strided_slice %0 {offsets = [0, 0], sizes = [15, 128], strides = [1, 1]} : vector<16x128xf32> to vector<15x128xf32>
    %c1 = arith.constant 1 : index
    %c0_3 = arith.constant 0 : index
    %6 = vector.load %arg5[%c1, %c0_3] : memref<16x384xf32, #tpu.memory_space<vmem>>, vector<15x128xf32>
    tpu.vector_store %arg5[%c1, %c0_3], %5 {strides = array<i32>} : memref<16x384xf32, #tpu.memory_space<vmem>>, vector<15x128xf32>,
    %7 = vector.extract_strided_slice %0 {offsets = [1, 0], sizes = [15, 128], strides = [1, 1]} : vector<16x128xf32> to vector<15x128xf32>
    %c0_4 = arith.constant 0 : index
    %c256 = arith.constant 256 : index
    %8 = vector.load %arg5[%c0_4, %c256] : memref<16x384xf32, #tpu.memory_space<vmem>>, vector<15x128xf32>
    tpu.vector_store %arg5[%c0_4, %c256], %7 {strides = array<i32>} : memref<16x384xf32, #tpu.memory_space<vmem>>, vector<15x128xf32>,
    %c0_5 = arith.constant 0 : index
    %c0_6 = arith.constant 0 : index
    %9 = vector.load %arg5[%c0_5, %c0_6] : memref<16x384xf32, #tpu.memory_space<vmem>>, vector<16x384xf32>
    %10 = arith.truncf %9 : vector<16x384xf32> to vector<16x384xbf16>
    %c0_7 = arith.constant 0 : index
    %c0_8 = arith.constant 0 : index
    %11 = vector.load %arg2[%c0_7, %c0_8] : memref<384x128xbf16, #tpu.memory_space<vmem>>, vector<384x128xbf16>
    %cst = arith.constant dense<0.000000e+00> : vector<16x128xf32>
    %12 = tpu.matmul %10, %11, %cst {dimension_numbers = #tpu.dot_dimension_numbers<[1], [0], [0], [1], [0, 0, 1, 1], [], []>} : vector<16x384xbf16>, vector<384x128xbf16>, vector<16x128xf32> -> vector<16x128xf32>
    %c0_9 = arith.constant 0 : index
    %c0_10 = arith.constant 0 : index
    %13 = vector.load %arg3[%c0_9, %c0_10] : memref<16x128xf32, #tpu.memory_space<vmem>>, vector<16x128xf32>
    tpu.vector_store %arg3[%c0_9, %c0_10], %12 {strides = array<i32>} : memref<16x128xf32, #tpu.memory_space<vmem>>, vector<16x128xf32>,
    %cst_11 = arith.constant dense<0.000000e+00> : vector<128xf32>
    %14 = vector.multi_reduction <add>, %12, %cst_11 [0] : vector<16x128xf32> to vector<128xf32>
    %15 = vector.shape_cast %14 : vector<128xf32> to vector<1x128xf32>
    %16 = arith.mulf %12, %12 : vector<16x128xf32>
    %cst_12 = arith.constant dense<0.000000e+00> : vector<128xf32>
    %17 = vector.multi_reduction <add>, %16, %cst_12 [0] : vector<16x128xf32> to vector<128xf32>
    %18 = vector.shape_cast %17 : vector<128xf32> to vector<1x128xf32>
    %cst_13 = arith.constant 0.000000e+00 : f32
    %19 = vector.broadcast %cst_13 : f32 to vector<6x128xf32>
    %20 = tpu.concatenate %15, %18, %19 in 0 : vector<1x128xf32>, vector<1x128xf32>, vector<6x128xf32> -> vector<8x128xf32>
    %c0_i32_14 = arith.constant 0 : i32
    %21 = arith.cmpi eq, %arg0, %c0_i32_14 : i32
    %22 = arith.extui %21 : i1 to i32
    %c0_i32_15 = arith.constant 0 : i32
    %23 = arith.cmpi ne, %22, %c0_i32_15 : i32
    scf.if %23 {
      %cst_20 = arith.constant 0.000000e+00 : f32
      %27 = vector.broadcast %cst_20 : f32 to vector<8x128xf32>
      %c0_21 = arith.constant 0 : index
      %c0_22 = arith.constant 0 : index
      %28 = vector.load %arg4[%c0_21, %c0_22] : memref<8x128xf32, #tpu.memory_space<vmem>>, vector<8x128xf32>
      tpu.vector_store %arg4[%c0_21, %c0_22], %27 {strides = array<i32>} : memref<8x128xf32, #tpu.memory_space<vmem>>, vector<8x128xf32>,
    } else {
    }
    %c0_16 = arith.constant 0 : index
    %c0_17 = arith.constant 0 : index
    %24 = vector.load %arg4[%c0_16, %c0_17] : memref<8x128xf32, #tpu.memory_space<vmem>>, vector<8x128xf32>
    %25 = arith.addf %24, %20 : vector<8x128xf32>
    %c0_18 = arith.constant 0 : index
    %c0_19 = arith.constant 0 : index
    %26 = vector.load %arg4[%c0_18, %c0_19] : memref<8x128xf32, #tpu.memory_space<vmem>>, vector<8x128xf32>
    tpu.vector_store %arg4[%c0_18, %c0_19], %25 {strides = array<i32>} : memref<8x128xf32, #tpu.memory_space<vmem>>, vector<8x128xf32>,
    return
  }
  func.func @transform_0(%arg0: i32) -> (i32, i32) {
    %c0_i32 = arith.constant 0 : i32
    %c0_i32_0 = arith.constant 0 : i32
    return %arg0, %c0_i32 : i32, i32
  }
  func.func @transform_1(%arg0: i32) -> (i32, i32) {
    %c0_i32 = arith.constant 0 : i32
    %c0_i32_0 = arith.constant 0 : i32
    %c0_i32_1 = arith.constant 0 : i32
    return %c0_i32, %c0_i32_0 : i32, i32
  }
  func.func @transform_2(%arg0: i32) -> (i32, i32) {
    %c0_i32 = arith.constant 0 : i32
    %c0_i32_0 = arith.constant 0 : i32
    return %arg0, %c0_i32 : i32, i32
  }
  func.func @transform_3(%arg0: i32) -> (i32, i32) {
    %c0_i32 = arith.constant 0 : i32
    %c0_i32_0 = arith.constant 0 : i32
    %c0_i32_1 = arith.constant 0 : i32
    return %c0_i32, %c0_i32_0 : i32, i32
  }
}

module attributes {stable_mosaic.version = 11 : i64} {
  func.func @_bn_relu_conv2_kernel(%arg0: i32, %arg1: memref<16x128xf32, #tpu.memory_space<vmem>>, %arg2: memref<1x128xf32, #tpu.memory_space<vmem>>, %arg3: memref<1x128xf32, #tpu.memory_space<vmem>>, %arg4: memref<384x128xbf16, #tpu.memory_space<vmem>>, %arg5: memref<16x128xf32, #tpu.memory_space<vmem>>, %arg6: memref<8x128xf32, #tpu.memory_space<vmem>>, %arg7: memref<16x384xf32, #tpu.memory_space<vmem>>) attributes {dimension_semantics = [#tpu.dimension_semantics<arbitrary>], iteration_bounds = array<i64: 2>, scalar_prefetch = 0 : i64, scratch_operands = 1 : i64, tpu.core_type = #tpu.core_type<tc>, window_params = [{transform_indices = @transform_0, window_bounds = array<i64: 16, 128>}, {pipeline_mode = #tpu.pipeline_mode<synchronous>, transform_indices = @transform_1, window_bounds = array<i64: 1, 128>}, {pipeline_mode = #tpu.pipeline_mode<synchronous>, transform_indices = @transform_2, window_bounds = array<i64: 1, 128>}, {pipeline_mode = #tpu.pipeline_mode<synchronous>, transform_indices = @transform_3, window_bounds = array<i64: 384, 128>}, {transform_indices = @transform_4, window_bounds = array<i64: 16, 128>}, {pipeline_mode = #tpu.pipeline_mode<synchronous>, transform_indices = @transform_5, window_bounds = array<i64: 8, 128>}]} {
    %c0 = arith.constant 0 : index
    %c0_0 = arith.constant 0 : index
    %0 = vector.load %arg1[%c0, %c0_0] : memref<16x128xf32, #tpu.memory_space<vmem>>, vector<16x128xf32>
    %c0_1 = arith.constant 0 : index
    %c0_2 = arith.constant 0 : index
    %1 = vector.load %arg2[%c0_1, %c0_2] : memref<1x128xf32, #tpu.memory_space<vmem>>, vector<1x128xf32>
    %2 = vector.broadcast %1 : vector<1x128xf32> to vector<16x128xf32>
    %3 = arith.mulf %0, %2 : vector<16x128xf32>
    %c0_3 = arith.constant 0 : index
    %c0_4 = arith.constant 0 : index
    %4 = vector.load %arg3[%c0_3, %c0_4] : memref<1x128xf32, #tpu.memory_space<vmem>>, vector<1x128xf32>
    %5 = vector.broadcast %4 : vector<1x128xf32> to vector<16x128xf32>
    %6 = arith.addf %3, %5 : vector<16x128xf32>
    %cst = arith.constant 0.000000e+00 : f32
    %7 = vector.broadcast %cst : f32 to vector<16x128xf32>
    %8 = arith.maximumf %6, %7 : vector<16x128xf32>
    %c0_i32 = arith.constant 0 : i32
    %9 = arith.cmpi eq, %arg0, %c0_i32 : i32
    %10 = arith.extui %9 : i1 to i32
    %c0_i32_5 = arith.constant 0 : i32
    %11 = arith.cmpi ne, %10, %c0_i32_5 : i32
    scf.if %11 {
      %cst_25 = arith.constant 0.000000e+00 : f32
      %35 = vector.broadcast %cst_25 : f32 to vector<1x128xf32>
      %c0_26 = arith.constant 0 : index
      %c0_27 = arith.constant 0 : index
      %36 = vector.load %arg7[%c0_26, %c0_27] : memref<16x384xf32, #tpu.memory_space<vmem>>, vector<1x128xf32>
      tpu.vector_store %arg7[%c0_26, %c0_27], %35 {strides = array<i32>} : memref<16x384xf32, #tpu.memory_space<vmem>>, vector<1x128xf32>,
      %c15 = arith.constant 15 : index
      %c256_28 = arith.constant 256 : index
      %37 = vector.load %arg7[%c15, %c256_28] : memref<16x384xf32, #tpu.memory_space<vmem>>, vector<1x128xf32>
      tpu.vector_store %arg7[%c15, %c256_28], %35 {strides = array<i32>} : memref<16x384xf32, #tpu.memory_space<vmem>>, vector<1x128xf32>,
    } else {
    }
    %c0_6 = arith.constant 0 : index
    %c128 = arith.constant 128 : index
    %12 = vector.load %arg7[%c0_6, %c128] : memref<16x384xf32, #tpu.memory_space<vmem>>, vector<16x128xf32>
    tpu.vector_store %arg7[%c0_6, %c128], %8 {strides = array<i32>} : memref<16x384xf32, #tpu.memory_space<vmem>>, vector<16x128xf32>,
    %13 = vector.extract_strided_slice %8 {offsets = [0, 0], sizes = [15, 128], strides = [1, 1]} : vector<16x128xf32> to vector<15x128xf32>
    %c1 = arith.constant 1 : index
    %c0_7 = arith.constant 0 : index
    %14 = vector.load %arg7[%c1, %c0_7] : memref<16x384xf32, #tpu.memory_space<vmem>>, vector<15x128xf32>
    tpu.vector_store %arg7[%c1, %c0_7], %13 {strides = array<i32>} : memref<16x384xf32, #tpu.memory_space<vmem>>, vector<15x128xf32>,
    %15 = vector.extract_strided_slice %8 {offsets = [1, 0], sizes = [15, 128], strides = [1, 1]} : vector<16x128xf32> to vector<15x128xf32>
    %c0_8 = arith.constant 0 : index
    %c256 = arith.constant 256 : index
    %16 = vector.load %arg7[%c0_8, %c256] : memref<16x384xf32, #tpu.memory_space<vmem>>, vector<15x128xf32>
    tpu.vector_store %arg7[%c0_8, %c256], %15 {strides = array<i32>} : memref<16x384xf32, #tpu.memory_space<vmem>>, vector<15x128xf32>,
    %c0_9 = arith.constant 0 : index
    %c0_10 = arith.constant 0 : index
    %17 = vector.load %arg7[%c0_9, %c0_10] : memref<16x384xf32, #tpu.memory_space<vmem>>, vector<16x384xf32>
    %18 = arith.truncf %17 : vector<16x384xf32> to vector<16x384xbf16>
    %c0_11 = arith.constant 0 : index
    %c0_12 = arith.constant 0 : index
    %19 = vector.load %arg4[%c0_11, %c0_12] : memref<384x128xbf16, #tpu.memory_space<vmem>>, vector<384x128xbf16>
    %cst_13 = arith.constant dense<0.000000e+00> : vector<16x128xf32>
    %20 = tpu.matmul %18, %19, %cst_13 {dimension_numbers = #tpu.dot_dimension_numbers<[1], [0], [0], [1], [0, 0, 1, 1], [], []>} : vector<16x384xbf16>, vector<384x128xbf16>, vector<16x128xf32> -> vector<16x128xf32>
    %c0_14 = arith.constant 0 : index
    %c0_15 = arith.constant 0 : index
    %21 = vector.load %arg5[%c0_14, %c0_15] : memref<16x128xf32, #tpu.memory_space<vmem>>, vector<16x128xf32>
    tpu.vector_store %arg5[%c0_14, %c0_15], %20 {strides = array<i32>} : memref<16x128xf32, #tpu.memory_space<vmem>>, vector<16x128xf32>,
    %cst_16 = arith.constant dense<0.000000e+00> : vector<128xf32>
    %22 = vector.multi_reduction <add>, %20, %cst_16 [0] : vector<16x128xf32> to vector<128xf32>
    %23 = vector.shape_cast %22 : vector<128xf32> to vector<1x128xf32>
    %24 = arith.mulf %20, %20 : vector<16x128xf32>
    %cst_17 = arith.constant dense<0.000000e+00> : vector<128xf32>
    %25 = vector.multi_reduction <add>, %24, %cst_17 [0] : vector<16x128xf32> to vector<128xf32>
    %26 = vector.shape_cast %25 : vector<128xf32> to vector<1x128xf32>
    %cst_18 = arith.constant 0.000000e+00 : f32
    %27 = vector.broadcast %cst_18 : f32 to vector<6x128xf32>
    %28 = tpu.concatenate %23, %26, %27 in 0 : vector<1x128xf32>, vector<1x128xf32>, vector<6x128xf32> -> vector<8x128xf32>
    %c0_i32_19 = arith.constant 0 : i32
    %29 = arith.cmpi eq, %arg0, %c0_i32_19 : i32
    %30 = arith.extui %29 : i1 to i32
    %c0_i32_20 = arith.constant 0 : i32
    %31 = arith.cmpi ne, %30, %c0_i32_20 : i32
    scf.if %31 {
      %cst_25 = arith.constant 0.000000e+00 : f32
      %35 = vector.broadcast %cst_25 : f32 to vector<8x128xf32>
      %c0_26 = arith.constant 0 : index
      %c0_27 = arith.constant 0 : index
      %36 = vector.load %arg6[%c0_26, %c0_27] : memref<8x128xf32, #tpu.memory_space<vmem>>, vector<8x128xf32>
      tpu.vector_store %arg6[%c0_26, %c0_27], %35 {strides = array<i32>} : memref<8x128xf32, #tpu.memory_space<vmem>>, vector<8x128xf32>,
    } else {
    }
    %c0_21 = arith.constant 0 : index
    %c0_22 = arith.constant 0 : index
    %32 = vector.load %arg6[%c0_21, %c0_22] : memref<8x128xf32, #tpu.memory_space<vmem>>, vector<8x128xf32>
    %33 = arith.addf %32, %28 : vector<8x128xf32>
    %c0_23 = arith.constant 0 : index
    %c0_24 = arith.constant 0 : index
    %34 = vector.load %arg6[%c0_23, %c0_24] : memref<8x128xf32, #tpu.memory_space<vmem>>, vector<8x128xf32>
    tpu.vector_store %arg6[%c0_23, %c0_24], %33 {strides = array<i32>} : memref<8x128xf32, #tpu.memory_space<vmem>>, vector<8x128xf32>,
    return
  }
  func.func @transform_0(%arg0: i32) -> (i32, i32) {
    %c0_i32 = arith.constant 0 : i32
    %c0_i32_0 = arith.constant 0 : i32
    return %arg0, %c0_i32 : i32, i32
  }
  func.func @transform_1(%arg0: i32) -> (i32, i32) {
    %c0_i32 = arith.constant 0 : i32
    %c0_i32_0 = arith.constant 0 : i32
    %c0_i32_1 = arith.constant 0 : i32
    return %c0_i32, %c0_i32_0 : i32, i32
  }
  func.func @transform_2(%arg0: i32) -> (i32, i32) {
    %c0_i32 = arith.constant 0 : i32
    %c0_i32_0 = arith.constant 0 : i32
    %c0_i32_1 = arith.constant 0 : i32
    return %c0_i32, %c0_i32_0 : i32, i32
  }
  func.func @transform_3(%arg0: i32) -> (i32, i32) {
    %c0_i32 = arith.constant 0 : i32
    %c0_i32_0 = arith.constant 0 : i32
    %c0_i32_1 = arith.constant 0 : i32
    return %c0_i32, %c0_i32_0 : i32, i32
  }
  func.func @transform_4(%arg0: i32) -> (i32, i32) {
    %c0_i32 = arith.constant 0 : i32
    %c0_i32_0 = arith.constant 0 : i32
    return %arg0, %c0_i32 : i32, i32
  }
  func.func @transform_5(%arg0: i32) -> (i32, i32) {
    %c0_i32 = arith.constant 0 : i32
    %c0_i32_0 = arith.constant 0 : i32
    %c0_i32_1 = arith.constant 0 : i32
    return %c0_i32, %c0_i32_0 : i32, i32
  }
}

module attributes {stable_mosaic.version = 11 : i64} {
  func.func @_bn_add_relu_kernel(%arg0: i32, %arg1: memref<16x128xf32, #tpu.memory_space<vmem>>, %arg2: memref<1x128xf32, #tpu.memory_space<vmem>>, %arg3: memref<1x128xf32, #tpu.memory_space<vmem>>, %arg4: memref<16x128xf32, #tpu.memory_space<vmem>>, %arg5: memref<16x128xf32, #tpu.memory_space<vmem>>) attributes {dimension_semantics = [#tpu.dimension_semantics<parallel>], iteration_bounds = array<i64: 2>, scalar_prefetch = 0 : i64, scratch_operands = 0 : i64, tpu.core_type = #tpu.core_type<tc>, window_params = [{transform_indices = @transform_0, window_bounds = array<i64: 16, 128>}, {pipeline_mode = #tpu.pipeline_mode<synchronous>, transform_indices = @transform_1, window_bounds = array<i64: 1, 128>}, {pipeline_mode = #tpu.pipeline_mode<synchronous>, transform_indices = @transform_2, window_bounds = array<i64: 1, 128>}, {transform_indices = @transform_3, window_bounds = array<i64: 16, 128>}, {transform_indices = @transform_4, window_bounds = array<i64: 16, 128>}]} {
    %c0 = arith.constant 0 : index
    %c0_0 = arith.constant 0 : index
    %0 = vector.load %arg1[%c0, %c0_0] : memref<16x128xf32, #tpu.memory_space<vmem>>, vector<16x128xf32>
    %c0_1 = arith.constant 0 : index
    %c0_2 = arith.constant 0 : index
    %1 = vector.load %arg2[%c0_1, %c0_2] : memref<1x128xf32, #tpu.memory_space<vmem>>, vector<1x128xf32>
    %2 = vector.broadcast %1 : vector<1x128xf32> to vector<16x128xf32>
    %3 = arith.mulf %0, %2 : vector<16x128xf32>
    %c0_3 = arith.constant 0 : index
    %c0_4 = arith.constant 0 : index
    %4 = vector.load %arg3[%c0_3, %c0_4] : memref<1x128xf32, #tpu.memory_space<vmem>>, vector<1x128xf32>
    %5 = vector.broadcast %4 : vector<1x128xf32> to vector<16x128xf32>
    %6 = arith.addf %3, %5 : vector<16x128xf32>
    %c0_5 = arith.constant 0 : index
    %c0_6 = arith.constant 0 : index
    %7 = vector.load %arg4[%c0_5, %c0_6] : memref<16x128xf32, #tpu.memory_space<vmem>>, vector<16x128xf32>
    %8 = arith.addf %6, %7 : vector<16x128xf32>
    %cst = arith.constant 0.000000e+00 : f32
    %9 = vector.broadcast %cst : f32 to vector<16x128xf32>
    %10 = arith.maximumf %8, %9 : vector<16x128xf32>
    %c0_7 = arith.constant 0 : index
    %c0_8 = arith.constant 0 : index
    %11 = vector.load %arg5[%c0_7, %c0_8] : memref<16x128xf32, #tpu.memory_space<vmem>>, vector<16x128xf32>
    tpu.vector_store %arg5[%c0_7, %c0_8], %10 {strides = array<i32>} : memref<16x128xf32, #tpu.memory_space<vmem>>, vector<16x128xf32>,
    return
  }
  func.func @transform_0(%arg0: i32) -> (i32, i32) {
    %c0_i32 = arith.constant 0 : i32
    %c0_i32_0 = arith.constant 0 : i32
    return %arg0, %c0_i32 : i32, i32
  }
  func.func @transform_1(%arg0: i32) -> (i32, i32) {
    %c0_i32 = arith.constant 0 : i32
    %c0_i32_0 = arith.constant 0 : i32
    %c0_i32_1 = arith.constant 0 : i32
    return %c0_i32, %c0_i32_0 : i32, i32
  }
  func.func @transform_2(%arg0: i32) -> (i32, i32) {
    %c0_i32 = arith.constant 0 : i32
    %c0_i32_0 = arith.constant 0 : i32
    %c0_i32_1 = arith.constant 0 : i32
    return %c0_i32, %c0_i32_0 : i32, i32
  }
  func.func @transform_3(%arg0: i32) -> (i32, i32) {
    %c0_i32 = arith.constant 0 : i32
    %c0_i32_0 = arith.constant 0 : i32
    return %arg0, %c0_i32 : i32, i32
  }
  func.func @transform_4(%arg0: i32) -> (i32, i32) {
    %c0_i32 = arith.constant 0 : i32
    %c0_i32_0 = arith.constant 0 : i32
    return %arg0, %c0_i32 : i32, i32
  }
}

</mosaic_0001>

<bundles_post_ra>
// kernel: squeeze.40
= control target key start
LH: loop header
LB: loop body
LE: loop exit
PB: predicated region body
PF: predicated region fallthrough
CT: control target
= control target key end

     0   :  { %s130_s8 = smov 104   ;;  %s131_s9 = smov 112   ;;  %vm7_vm0 = vcmask 64512   ;;  %s221_s0 = inlined_call_operand.vmem [shape: f32[128], index: 0, kind: input, shape index: {}]   ;;  %s222_s1 = inlined_call_operand.vmem [shape: f32[16,8], index: 1, kind: output, shape index: {}]  }
   0x1   :  { %v4_v0 = vld [vmem:[%s221_s0] sm:$0x1]  ;;  %s129_s0 = smov 120   ;;  %s132_s10 = smov 96  }
   0x2   :  { %5 = vst [vmem:[#allocation0] sm:$0x1] %v4_v0  ;;  %s133_s11 = smov 88   ;;  %s134_s12 = smov 80  }
   0x3   :  { %s135_s13 = smov 72   ;;  %s136_s14 = smov 64  }
   0x4   :  { %s137_s17 = smov 56   ;;  %s138_s18 = smov 48  }
   0x5   :  { %s139_s19 = smov 40   ;;  %s140_s20 = smov 32  }
   0x6   :  { %s141_s21 = smov 24   ;;  %s142_s22 = smov 16  }
   0x7   :  { %s143_s23 = smov 8  }
   0x9   :  { %v9_v1 = vld [vmem:[#allocation0] sm:$0x1]  }
   0xa   :  { %v21_v2 = vld [vmem:[#allocation0] sm:$0x1]   ;;  %10 = vrot.lane.b32.xlu0 %v9_v1, %s129_s0 }
   0xb   :  { %22 = vrot.lane.b32.xlu1 %v21_v2, %s130_s8  ;;  %v15_v3 = vld [vmem:[#allocation0] sm:$0x1]  }
   0xc   :  { %v27_v4 = vld [vmem:[#allocation0] sm:$0x1]  }
   0xd   :  { %v33_v5 = vld [vmem:[#allocation0] sm:$0x1]  }
   0xe   :  { %16 = vrot.lane.b32.xlu0 %v15_v3, %s131_s9  ;;  %v39_v6 = vld [vmem:[#allocation0] sm:$0x1]  }
   0xf   :  { %28 = vrot.lane.b32.xlu1 %v27_v4, %s132_s10  ;;  %v45_v7 = vld [vmem:[#allocation0] sm:$0x1]  }
  0x10   :  { %v51_v8 = vld [vmem:[#allocation0] sm:$0x1]  }
  0x11   :  { %v57_v9 = vld [vmem:[#allocation0] sm:$0x1]  }
  0x12   :  { %34 = vrot.lane.b32.xlu0 %v33_v5, %s133_s11  ;;  %v63_v10 = vld [vmem:[#allocation0] sm:$0x1]  }
  0x13   :  { %40 = vrot.lane.b32.xlu1 %v39_v6, %s134_s12  ;;  %v6_v11 = vld [vmem:[#allocation0] sm:$0x1]  }
  0x14   :  { %8 = vst.msk [vmem:[%s222_s1] sm:$0x1] %vm7_vm0, %v6_v11   ;;  %v69_v12 = vld [vmem:[#allocation0] sm:$0x1]  }
  0x15   :  { %v75_v13 = vld [vmem:[#allocation0] sm:$0x1]  }
  0x16   :  { %46 = vrot.lane.b32.xlu0 %v45_v7, %s135_s13  ;;  %v81_v14 = vld [vmem:[#allocation0] sm:$0x1]  }
  0x17   :  { %52 = vrot.lane.b32.xlu1 %v51_v8, %s136_s14  ;;  %v87_v15 = vld [vmem:[#allocation0] sm:$0x1]  }
  0x18   :  { %v93_v16 = vld [vmem:[#allocation0] sm:$0x1]  }
  0x1a   :  { %58 = vrot.lane.b32.xlu0 %v57_v9, %s137_s17 }
  0x1b   :  { %64 = vrot.lane.b32.xlu1 %v63_v10, %s138_s18 }
  0x1e   :  { %70 = vrot.lane.b32.xlu0 %v69_v12, %s139_s19 }
  0x1f   :  { %76 = vrot.lane.b32.xlu1 %v75_v13, %s140_s20 }
  0x22   :  { %82 = vrot.lane.b32.xlu0 %v81_v14, %s141_s21 }
  0x23   :  { %88 = vrot.lane.b32.xlu1 %v87_v15, %s142_s22 }
  0x26   :  { %94 = vrot.lane.b32.xlu0 %v93_v16, %s143_s23 }
  0x7c   :  { %v11_v17 = vpop.permute.xlu0 %10  }
  0x7d   :  { %v23_v18 = vpop.permute.xlu1 %22   ;;  %99 = vst.msk [vmem:[%s222_s1 + $0x1] sm:$0x1] %vm7_vm0, %v11_v17  }
  0x7e   :  { %101 = vst.msk [vmem:[%s222_s1 + $0x3] sm:$0x1] %vm7_vm0, %v23_v18  }
  0x80   :  { %v17_v19 = vpop.permute.xlu0 %16  }
  0x81   :  { %v29_v20 = vpop.permute.xlu1 %28   ;;  %100 = vst.msk [vmem:[%s222_s1 + $0x2] sm:$0x1] %vm7_vm0, %v17_v19  }
  0x82   :  { %102 = vst.msk [vmem:[%s222_s1 + $0x4] sm:$0x1] %vm7_vm0, %v29_v20  }
  0x84   :  { %v35_v21 = vpop.permute.xlu0 %34  }
  0x85   :  { %v41_v22 = vpop.permute.xlu1 %40   ;;  %103 = vst.msk [vmem:[%s222_s1 + $0x5] sm:$0x1] %vm7_vm0, %v35_v21  }
  0x86   :  { %104 = vst.msk [vmem:[%s222_s1 + $0x6] sm:$0x1] %vm7_vm0, %v41_v22  }
  0x88   :  { %v47_v23 = vpop.permute.xlu0 %46  }
  0x89   :  { %v53_v24 = vpop.permute.xlu1 %52   ;;  %105 = vst.msk [vmem:[%s222_s1 + $0x7] sm:$0x1] %vm7_vm0, %v47_v23  }
  0x8a   :  { %106 = vst.msk [vmem:[%s222_s1 + $0x8] sm:$0x1] %vm7_vm0, %v53_v24  }
  0x8c   :  { %v59_v25 = vpop.permute.xlu0 %58  }
  0x8d   :  { %v65_v26 = vpop.permute.xlu1 %64   ;;  %107 = vst.msk [vmem:[%s222_s1 + $0x9] sm:$0x1] %vm7_vm0, %v59_v25  }
  0x8e   :  { %108 = vst.msk [vmem:[%s222_s1 + $0xa] sm:$0x1] %vm7_vm0, %v65_v26  }
  0x90   :  { %v71_v27 = vpop.permute.xlu0 %70  }
  0x91   :  { %v77_v28 = vpop.permute.xlu1 %76   ;;  %109 = vst.msk [vmem:[%s222_s1 + $0xb] sm:$0x1] %vm7_vm0, %v71_v27  }
  0x92   :  { %110 = vst.msk [vmem:[%s222_s1 + $0xc] sm:$0x1] %vm7_vm0, %v77_v28  }
  0x94   :  { %v83_v29 = vpop.permute.xlu0 %82  }
  0x95   :  { %v89_v30 = vpop.permute.xlu1 %88   ;;  %111 = vst.msk [vmem:[%s222_s1 + $0xd] sm:$0x1] %vm7_vm0, %v83_v29  }
  0x96   :  { %112 = vst.msk [vmem:[%s222_s1 + $0xe] sm:$0x1] %vm7_vm0, %v89_v30  }
  0x98   :  { %v95_v31 = vpop.permute.xlu0 %94  }
  0x99   :  { %113 = vst.msk [vmem:[%s222_s1 + $0xf] sm:$0x1] %vm7_vm0, %v95_v31  }

// kernel: tile.23
= control target key start
LH: loop header
LB: loop body
LE: loop exit
PB: predicated region body
PF: predicated region fallthrough
CT: control target
= control target key end

     0   :  { %s28_s0 = inlined_call_operand.vmem [shape: f32[8], index: 0, kind: input, shape index: {}]   ;;  %s29_s1 = inlined_call_operand.vmem [shape: f32[16,8], index: 1, kind: output, shape index: {}]  }
   0x1   :  { %v4_v0 = vld [vmem:[%s28_s0] ss:$0 sm:$0xff] }
   0x2   :  { %5 = vst [vmem:[%s29_s1] sm:$0xff] %v4_v0  ;;  %8 = vst [vmem:[%s29_s1 + $0x8] sm:$0xff] %v4_v0 }

// kernel: basic_block_forward.3
= control target key start
LH: loop header
LB: loop body
LE: loop exit
PB: predicated region body
PF: predicated region fallthrough
CT: control target
= control target key end

     0   :  { %s730_s12 = smov 0   ;;  %s851_s0 = inlined_call_operand.vmem [shape: f32[32,128], index: 0, kind: input, shape index: {}]   ;;  %s852_s1 = inlined_call_operand.vmem [shape: bf16[384,128], index: 1, kind: input, shape index: {}]   ;;  %s853_s2 = inlined_call_operand.vmem [shape: f32[32,128], index: 2, kind: output, shape index: {0}]   ;;  %s854_s3 = inlined_call_operand.vmem [shape: f32[8,128], index: 3, kind: output, shape index: {1}]  }
   0x1 LB: > { %s574_s13 = sadd.s32 4294967295, %s704_s12   ;;  %p578_p0 = scmp.ge.s32.totalorder %s704_s12, 1  ;;  %s704_s12 = sphi %s730_s12, %s14_s12  }
   0x2   : > { %p136_p1 = scmp.lt.s32.totalorder %s704_s12, 3 }
   0x4   : > { %p137_p2 = pnand %p578_p0, %p136_p1 }
   0x5   : > { %s579_s14 = sshll.u32 (!%p137_p2), %s574_s13, 1  ;;  %p746_p4 = scmp.ne.s32.totalorder (!%p137_p2), %s574_s13, 0 }
   0x6   : > { %140 = sbr.rel (%p137_p2) target bundleno = 294 (0x126), region = 28  ;;  %p161_p3 = scmp.lt.s32.totalorder (!%p137_p2), %s579_s14, 3 }
   0xd   : > { %s857_s14 = smov (!%p161_p3, %s579_s14), 3  ;;  %178 = sbr.rel (%p746_p4) target bundleno = 20 (0x14), region = 32 }
   0xe   : > { %s580_s15 = sshll.u32 %s857_s14, 3  ;;  %v706_v2 = vmov (!%p746_p4), 0.0  }
   0xf   : > { %s164_s18 = scalar_lea.vmem %s851_s0, %s580_s15  ;;  %s744_s21 = scalar_lea.vmem %s853_s2, %s580_s15  ;;  %179 = vst [vmem:[#allocation2] sm:$0x1] (!%p746_p4), %v706_v2  ;;  %180 = vst [vmem:[#allocation2 + $0x2f] sm:$0x1] (!%p746_p4), %v706_v2 }
  0x10   : > { %v173_v0 = vld [vmem:[%s164_s18] sm:$0xff]  ;;  %v174_v1 = vld [vmem:[%s164_s18 + $0x8] sm:$0xff] }
  0x14 PF: > { %v674_v3 = vld [vmem:[%s852_s1 + $0x40] sm:$0xff]   ;;  %v208_v4 = vpack.c.bf16 %v174_v1, %v173_v0  ;;  %v707_v5 = vmov 0.0   ;;  %vm185_vm0 = vcmask 1040384   ;;  %v677_v8 = vld [vmem:[%s852_s1 + $0x48] sm:$0xff]   ;;  %vm708_vm1 = vmmov 0   ;;  %v680_v13 = vld [vmem:[%s852_s1 + $0x50] sm:$0xff]  }
  0x15   : > { %642 = vmatprep.subr.bf16.mxu1 %v707_v5  ;;  %v675_v6 = vld [vmem:[%s852_s1] sm:$0xff]   ;;  %611 = vmatprep.subr.bf16.mxu0 %v674_v3  ;;  %v186_v9 = vrot.slane %v173_v0, 7  ;;  %v678_v10 = vld [vmem:[%s852_s1 + $0x8] sm:$0xff]   ;;  %v187_v11 = vrot.slane %v174_v1, 7  ;;  %vm193_vm2 = vcmask 1046528   ;;  %v194_v15 = vrot.slane %v173_v0, 1 }
  0x16   : > { %v676_v7 = vld [vmem:[%s852_s1 + $0x80] sm:$0xff]   ;;  %434 = vmatprep.mubr.bf16.mxu0 %v208_v4  ;;  %612 = vmatpush3.bf16.msra.mxu0 %v675_v6  ;;  %v679_v12 = vld [vmem:[%s852_s1 + $0x88] sm:$0xff]   ;;  %v681_v16 = vld [vmem:[%s852_s1 + $0x10] sm:$0xff]   ;;  %v195_v17 = vrot.slane %v174_v1, 1  ;;  %vm503_vm3 = vcmask 1041408  }
  0x17   : > { %658 = vmatprep.mubr.msk.bf16.mxu1 %vm708_vm1, %v707_v5  ;;  %643 = vmatpush3.bf16.msra.mxu1 %v676_v7  ;;  %191 = vst [vmem:[#allocation2] sm:$0xfe] %v186_v9  ;;  %v188_v14 = vsel %vm185_vm0, %v186_v9, %v187_v11  ;;  %v682_v18 = vld [vmem:[%s852_s1 + $0x90] sm:$0xff]   ;;  %v683_v19 = vld [vmem:[%s852_s1 + $0x58] sm:$0xff]   ;;  %v686_v23 = vld [vmem:[%s852_s1 + $0x60] sm:$0xff]  }
  0x18   : > { %613 = vmatprep.subr.bf16.mxu0 %v677_v8  ;;  %644 = vmatprep.subr.bf16.mxu1 %v707_v5  ;;  %v196_v20 = vsel %vm193_vm2, %v194_v15, %v195_v17  ;;  %200 = vst [vmem:[#allocation2 + $0x28] sm:$0x7f] %v195_v17  ;;  %v684_v21 = vld [vmem:[%s852_s1 + $0x18] sm:$0xff]   ;;  %v687_v24 = vld [vmem:[%s852_s1 + $0x20] sm:$0xff]   ;;  %v689_v26 = vld [vmem:[%s852_s1 + $0x68] sm:$0xff]  }
  0x19   : > { %v685_v22 = vld [vmem:[%s852_s1 + $0x98] sm:$0xff]   ;;  %v688_v25 = vld [vmem:[%s852_s1 + $0xa0] sm:$0xff]   ;;  %v690_v27 = vld [vmem:[%s852_s1 + $0x28] sm:$0xff]  }
  0x1a   : > { %614 = vmatpush3.bf16.msra.mxu0 %v678_v10  ;;  %v691_v28 = vld [vmem:[%s852_s1 + $0xa8] sm:$0xff]   ;;  %v692_v29 = vld [vmem:[%s852_s1 + $0x70] sm:$0xff]   ;;  %v695_v32 = vld [vmem:[%s852_s1 + $0x78] sm:$0xff]  }
  0x1b   : > { %645 = vmatpush3.bf16.msra.mxu1 %v679_v12  ;;  %615 = vmatprep.subr.bf16.mxu0 %v680_v13  ;;  %v693_v30 = vld [vmem:[%s852_s1 + $0x30] sm:$0xff]   ;;  %v696_v33 = vld [vmem:[%s852_s1 + $0x38] sm:$0xff]  }
  0x1c   : > { %646 = vmatprep.subr.bf16.mxu1 %v707_v5  ;;  %v694_v31 = vld [vmem:[%s852_s1 + $0xb0] sm:$0xff]   ;;  %v697_v35 = vld [vmem:[%s852_s1 + $0xb8] sm:$0xff]  }
  0x1e   : > { %616 = vmatpush3.bf16.msra.mxu0 %v681_v16  ;;  %v201_v34 = vld [vmem:[#allocation2] sm:$0xff] }
  0x1f   : > { %647 = vmatpush3.bf16.msra.mxu1 %v682_v18  ;;  %617 = vmatprep.subr.bf16.mxu0 %v683_v19  ;;  %v206_v36 = vld [vmem:[#allocation2 + $0x28] sm:$0xff]  ;;  %v207_v37 = vpack.c.bf16 %v188_v14, %v201_v34 }
  0x20   : > { %648 = vmatprep.subr.bf16.mxu1 %v707_v5  ;;  %v209_v38 = vpack.c.bf16 %v206_v36, %v196_v20 }
  0x22   : > { %618 = vmatpush3.bf16.msra.mxu0 %v684_v21 }
  0x23   : > { %649 = vmatpush3.bf16.msra.mxu1 %v685_v22  ;;  %619 = vmatprep.subr.bf16.mxu0 %v686_v23 }
  0x24   : > { %650 = vmatprep.subr.bf16.mxu1 %v707_v5 }
  0x26   : > { %620 = vmatpush3.bf16.msra.mxu0 %v687_v24 }
  0x27   : > { %651 = vmatpush3.bf16.msra.mxu1 %v688_v25  ;;  %621 = vmatprep.subr.bf16.mxu0 %v689_v26 }
  0x28   : > { %652 = vmatprep.subr.bf16.mxu1 %v707_v5 }
  0x2a   : > { %622 = vmatpush3.bf16.msra.mxu0 %v690_v27 }
  0x2b   : > { %653 = vmatpush3.bf16.msra.mxu1 %v691_v28  ;;  %623 = vmatprep.subr.bf16.mxu0 %v692_v29 }
  0x2c   : > { %654 = vmatprep.subr.bf16.mxu1 %v707_v5 }
  0x2e   : > { %624 = vmatpush3.bf16.msra.mxu0 %v693_v30 }
  0x2f   : > { %655 = vmatpush3.bf16.msra.mxu1 %v694_v31  ;;  %625 = vmatprep.subr.bf16.mxu0 %v695_v32 }
  0x30   : > { %656 = vmatprep.subr.bf16.mxu1 %v707_v5  ;;  %v709_v5 = vmov (!%p746_p4), 0.0  }
  0x31   : > { %508 = vst [vmem:[%s854_s3] sm:$0xff] (!%p746_p4), %v709_v5 }
  0x32   : > { %626 = vmatpush3.bf16.msra.mxu0 %v696_v33 }
  0x33   : > { %657 = vmatpush3.bf16.msra.mxu1 %v697_v35 }
  0x35   : > { %435 = vmatmul.mubr.bf16.vlgmr.msra.gmra.mrb[0].mxu0 %v207_v37 }
  0x36   : > { %659 = vmatmul.mubr.bf16.vlgmr.msra.gmra.mrb[0].mxu1 %v209_v38 }
 0x108   : > { %v627_v39 = vpop.f32.mrb[0].mxu0 }
 0x109   : > { %v477_v40 = vpop.f32.mrb[0].mxu1  ;;  %v628_v41 = vpop.f32.mrb[1].mxu0 }
 0x10a   : > { %v629_v42 = vadd.f32 %v628_v41, %v627_v39  ;;  %v660_v43 = vpop.f32.mrb[1].mxu1  ;;  %v630_v44 = vpop.f32.mrb[2].mxu0 }
 0x10b   : > { %v480_v45 = vpop.f32.mrb[2].mxu1  ;;  %v631_v46 = vpop.f32.mrb[3].mxu0 }
 0x10c   : > { %v478_v47 = vadd.f32 %v629_v42, %v477_v40  ;;  %v632_v48 = vadd.f32 %v631_v46, %v630_v44  ;;  %v661_v49 = vpop.f32.mrb[3].mxu1 }
 0x10e   : > { %484 = vst [vmem:[%s744_s21] sm:$0xff] %v478_v47  ;;  %v481_v50 = vadd.f32 %v632_v48, %v480_v45  ;;  %v493_v51 = vmul.f32 %v478_v47, %v478_v47 }
 0x110   : > { %485 = vst [vmem:[%s744_s21 + $0x8] sm:$0xff] %v481_v50  ;;  %v486_v52 = vadd.f32 %v481_v50, %v478_v47  ;;  %v494_v53 = vmul.f32 %v481_v50, %v481_v50 }
 0x112   : > { %v487_v54 = vrot.slane %v486_v52, 4  ;;  %v495_v55 = vadd.f32 %v494_v53, %v493_v51 }
 0x114   : > { %v488_v56 = vadd.f32 %v487_v54, %v486_v52  ;;  %v496_v57 = vrot.slane %v495_v55, 4 }
 0x116   : > { %v489_v58 = vrot.slane %v488_v56, 2  ;;  %v497_v59 = vadd.f32 %v496_v57, %v495_v55 }
 0x118   : > { %v490_v60 = vadd.f32 %v489_v58, %v488_v56  ;;  %v498_v61 = vrot.slane %v497_v59, 2 }
 0x11a   : > { %v491_v62 = vrot.slane %v490_v60, 1  ;;  %v499_v63 = vadd.f32 %v498_v61, %v497_v59 }
 0x11b   : > { %507 = sbr.rel (%p746_p4) target bundleno = 290 (0x122), region = 36 }
 0x11c   : > { %v500_v0 = vrot.slane %v499_v63, 1  ;;  %v492_v1 = vadd.f32 %v491_v62, %v490_v60 }
 0x11e   : > { %v501_v2 = vadd.f32 %v500_v0, %v499_v63 }
 0x120   : > { %v502_v3 = vsel %vm185_vm0, %v492_v1, %v501_v2 }
 0x121   : > { %v504_v4 = vsel %vm503_vm3, %v502_v3, 0.0 }
 0x122 PF: > { %v509_v6 = vld [vmem:[%s854_s3] sm:$0xff] }
 0x123   : > { %v510_v7 = vadd.f32 %v509_v6, %v504_v4 }
 0x125   : > { %511 = vst [vmem:[%s854_s3] sm:$0xff] %v510_v7 }
 0x126 PF: > { %s14_s12 = sadd.s32 1, %s704_s12  }
 0x127   : > { %p11_p5 = scmp.ge.s32.totalorder %s14_s12, 4  }
 0x129   :  { %13 = sbr.rel (!%p11_p5) target bundleno = 1 (0x1), region = 74 }

// kernel: tile.24
= control target key start
LH: loop header
LB: loop body
LE: loop exit
PB: predicated region body
PF: predicated region fallthrough
CT: control target
= control target key end

     0   :  { %s131_s10 = smov 120   ;;  %s132_s11 = smov 104   ;;  %vm3_vm0 = vcmask 64512   ;;  %vm9_vm1 = vcmask 1048512   ;;  %vm15_vm2 = vcmask 982912   ;;  %vm21_vm3 = vcmask 917312   ;;  %s207_s0 = inlined_call_operand.vmem [shape: f32[16,8], index: 0, kind: input, shape index: {}]   ;;  %s208_s1 = inlined_call_operand.vmem [shape: f32[1,128], index: 1, kind: output, shape index: {}]  }
   0x1   :  { %v101_v0 = vld [vmem:[%s207_s0 + $0xf] sm:$0x1]   ;;  %v103_v1 = vld [vmem:[%s207_s0 + $0xd] sm:$0x1]   ;;  %v102_v2 = vld [vmem:[%s207_s0 + $0xe] sm:$0x1]  }
   0x2   :  { %7 = vrot.lane.b32.xlu0 %v101_v0, %s131_s10  ;;  %19 = vrot.lane.b32.xlu1 %v103_v1, %s132_s11  ;;  %v104_v3 = vld [vmem:[%s207_s0 + $0xc] sm:$0x1]   ;;  %s133_s16 = smov 112   ;;  %s134_s17 = smov 96   ;;  %v105_v4 = vld [vmem:[%s207_s0 + $0xb] sm:$0x1]  }
   0x3   :  { %v106_v5 = vld [vmem:[%s207_s0 + $0xa] sm:$0x1]   ;;  %v2_v6 = vld [vmem:[%s207_s0] sm:$0x1]   ;;  %s135_s24 = smov 88   ;;  %s136_s25 = smov 80  }
   0x4   :  { %4 = vst.msk [vmem:[#allocation0] sm:$0x1] %vm3_vm0, %v2_v6   ;;  %v107_v7 = vld [vmem:[%s207_s0 + $0x9] sm:$0x1]   ;;  %v108_v8 = vld [vmem:[%s207_s0 + $0x8] sm:$0x1]  }
   0x5   :  { %s137_s30 = smov 72   ;;  %s138_s2 = smov 64   ;;  %v109_v9 = vld [vmem:[%s207_s0 + $0x7] sm:$0x1]   ;;  %v110_v10 = vld [vmem:[%s207_s0 + $0x6] sm:$0x1]  }
   0x6   :  { %13 = vrot.lane.b32.xlu0 %v102_v2, %s133_s16  ;;  %25 = vrot.lane.b32.xlu1 %v104_v3, %s134_s17  ;;  %s139_s7 = smov 56   ;;  %s140_s8 = smov 48   ;;  %v111_v11 = vld [vmem:[%s207_s0 + $0x5] sm:$0x1]   ;;  %v112_v12 = vld [vmem:[%s207_s0 + $0x4] sm:$0x1]  }
   0x7   :  { %s141_s13 = smov 40   ;;  %s142_s14 = smov 32   ;;  %v113_v13 = vld [vmem:[%s207_s0 + $0x3] sm:$0x1]   ;;  %v114_v14 = vld [vmem:[%s207_s0 + $0x2] sm:$0x1]  }
   0x8   :  { %s143_s19 = smov 24   ;;  %s144_s20 = smov 16   ;;  %v115_v15 = vld [vmem:[%s207_s0 + $0x1] sm:$0x1]   ;;  %vm27_vm4 = vcmask 851712   ;;  %vm33_vm5 = vcmask 786112  }
   0x9   :  { %s145_s0 = smov 8   ;;  %vm39_vm6 = vcmask 720512   ;;  %vm45_vm7 = vcmask 654912   ;;  %vm51_vm8 = vcmask 589312   ;;  %vm57_vm9 = vcmask 523712  }
   0xa   :  { %31 = vrot.lane.b32.xlu0 %v105_v4, %s135_s24  ;;  %37 = vrot.lane.b32.xlu1 %v106_v5, %s136_s25  ;;  %vm63_vm10 = vcmask 458112   ;;  %vm69_vm11 = vcmask 392512   ;;  %vm75_vm12 = vcmask 326912   ;;  %vm81_vm13 = vcmask 261312  }
   0xb   :  { %vm87_vm14 = vcmask 195712   ;;  %vm93_vm15 = vcmask 130112  }
   0xe   :  { %43 = vrot.lane.b32.xlu0 %v107_v7, %s137_s30  ;;  %49 = vrot.lane.b32.xlu1 %v108_v8, %s138_s2 }
  0x12   :  { %55 = vrot.lane.b32.xlu0 %v109_v9, %s139_s7  ;;  %61 = vrot.lane.b32.xlu1 %v110_v10, %s140_s8 }
  0x16   :  { %67 = vrot.lane.b32.xlu0 %v111_v11, %s141_s13  ;;  %73 = vrot.lane.b32.xlu1 %v112_v12, %s142_s14 }
  0x1a   :  { %79 = vrot.lane.b32.xlu0 %v113_v13, %s143_s19  ;;  %85 = vrot.lane.b32.xlu1 %v114_v14, %s144_s20 }
  0x1e   :  { %91 = vrot.lane.b32.xlu0 %v115_v15, %s145_s0 }
  0x74   :  { %v8_v16 = vpop.permute.xlu0 %7   ;;  %v20_v17 = vpop.permute.xlu1 %19  }
  0x75   :  { %10 = vst.msk [vmem:[#allocation0] sm:$0x1] %vm9_vm1, %v8_v16  }
  0x78   :  { %v14_v18 = vpop.permute.xlu0 %13   ;;  %v26_v19 = vpop.permute.xlu1 %25  }
  0x79   :  { %16 = vst.msk [vmem:[#allocation0] sm:$0x1] %vm15_vm2, %v14_v18  }
  0x7a   :  { %22 = vst.msk [vmem:[#allocation0] sm:$0x1] %vm21_vm3, %v20_v17  }
  0x7b   :  { %28 = vst.msk [vmem:[#allocation0] sm:$0x1] %vm27_vm4, %v26_v19  }
  0x7c   :  { %v32_v20 = vpop.permute.xlu0 %31   ;;  %v38_v21 = vpop.permute.xlu1 %37  }
  0x7d   :  { %34 = vst.msk [vmem:[#allocation0] sm:$0x1] %vm33_vm5, %v32_v20  }
  0x7e   :  { %40 = vst.msk [vmem:[#allocation0] sm:$0x1] %vm39_vm6, %v38_v21  }
  0x80   :  { %v44_v22 = vpop.permute.xlu0 %43   ;;  %v50_v23 = vpop.permute.xlu1 %49  }
  0x81   :  { %46 = vst.msk [vmem:[#allocation0] sm:$0x1] %vm45_vm7, %v44_v22  }
  0x82   :  { %52 = vst.msk [vmem:[#allocation0] sm:$0x1] %vm51_vm8, %v50_v23  }
  0x84   :  { %v56_v24 = vpop.permute.xlu0 %55   ;;  %v62_v25 = vpop.permute.xlu1 %61  }
  0x85   :  { %58 = vst.msk [vmem:[#allocation0] sm:$0x1] %vm57_vm9, %v56_v24  }
  0x86   :  { %64 = vst.msk [vmem:[#allocation0] sm:$0x1] %vm63_vm10, %v62_v25  }
  0x88   :  { %v68_v26 = vpop.permute.xlu0 %67   ;;  %v74_v27 = vpop.permute.xlu1 %73  }
  0x89   :  { %70 = vst.msk [vmem:[#allocation0] sm:$0x1] %vm69_vm11, %v68_v26  }
  0x8a   :  { %76 = vst.msk [vmem:[#allocation0] sm:$0x1] %vm75_vm12, %v74_v27  }
  0x8c   :  { %v80_v28 = vpop.permute.xlu0 %79   ;;  %v86_v29 = vpop.permute.xlu1 %85  }
  0x8d   :  { %82 = vst.msk [vmem:[#allocation0] sm:$0x1] %vm81_vm13, %v80_v28  }
  0x8e   :  { %88 = vst.msk [vmem:[#allocation0] sm:$0x1] %vm87_vm14, %v86_v29  }
  0x90   :  { %v92_v30 = vpop.permute.xlu0 %91  }
  0x91   :  { %94 = vst.msk [vmem:[#allocation0] sm:$0x1] %vm93_vm15, %v92_v30  }
  0x98   :  { %v98_v31 = vld [vmem:[#allocation0] sm:$0x1] }
  0x99   :  { %100 = vst [vmem:[%s208_s1] sm:$0x1] %v98_v31 }

// kernel: basic_block_forward.5
= control target key start
LH: loop header
LB: loop body
LE: loop exit
PB: predicated region body
PF: predicated region fallthrough
CT: control target
= control target key end

     0   :  { %s375_s15 = smov 0   ;;  %s401_s0 = inlined_call_operand.vmem [shape: f32[32,128], index: 0, kind: input, shape index: {}]   ;;  %s402_s1 = inlined_call_operand.vmem [shape: f32[1,128], index: 1, kind: input, shape index: {}]   ;;  %s403_s2 = inlined_call_operand.vmem [shape: f32[1,128], index: 2, kind: input, shape index: {}]   ;;  %s404_s3 = inlined_call_operand.vmem [shape: f32[32,128], index: 3, kind: input, shape index: {}]   ;;  %s405_s4 = inlined_call_operand.vmem [shape: f32[32,128], index: 4, kind: output, shape index: {}]  }
   0x1 LB: > { %s319_s16 = sadd.s32 4294967295, %s348_s15   ;;  %p323_p0 = scmp.ge.s32.totalorder %s348_s15, 1  ;;  %s348_s15 = sphi %s375_s15, %s14_s15  }
   0x2   : > { %p174_p1 = scmp.lt.s32.totalorder %s348_s15, 3 }
   0x4   : > { %p175_p2 = pnand %p323_p0, %p174_p1 }
   0x5   : > { %s324_s17 = sshll.u32 (!%p175_p2), %s319_s16, 1  ;;  %v330_v0 = vld [vmem:[%s402_s1] ss:$0 sm:$0xff] (!%p175_p2) }
   0x6   : > { %178 = sbr.rel (%p175_p2) target bundleno = 26 (0x1a), region = 36  ;;  %p206_p3 = scmp.lt.s32.totalorder (!%p175_p2), %s324_s17, 3  ;;  %v331_v3 = vld [vmem:[%s403_s2] ss:$0 sm:$0xff] (!%p175_p2) }
   0xd   : > { %s407_s17 = smov (!%p206_p3, %s324_s17), 3 }
   0xe   : > { %s325_s18 = sshll.u32 %s407_s17, 3 }
   0xf   : > { %s209_s23 = scalar_lea.vmem %s401_s0, %s325_s18  ;;  %s215_s26 = scalar_lea.vmem %s404_s3, %s325_s18 }
  0x10   : > { %v223_v1 = vld [vmem:[%s209_s23] sm:$0xff]  ;;  %v224_v2 = vld [vmem:[%s209_s23 + $0x8] sm:$0xff]  ;;  %s221_s5 = scalar_lea.vmem %s405_s4, %s325_s18 }
  0x11   : > { %v232_v4 = vmul.f32 %v330_v0, %v223_v1  ;;  %v233_v5 = vmul.f32 %v330_v0, %v224_v2  ;;  %v243_v6 = vld [vmem:[%s215_s26] sm:$0xff]  ;;  %v244_v7 = vld [vmem:[%s215_s26 + $0x8] sm:$0xff] }
  0x13   : > { %v241_v8 = vadd.f32 %v331_v3, %v232_v4  ;;  %v242_v9 = vadd.f32 %v331_v3, %v233_v5 }
  0x15   : > { %v245_v10 = vadd.f32 %v243_v6, %v241_v8  ;;  %v246_v11 = vadd.f32 %v244_v7, %v242_v9 }
  0x17   : > { %v247_v12 = vmax.f32 %v245_v10, 0.0  ;;  %v248_v13 = vmax.f32 %v246_v11, 0.0 }
  0x19   : > { %249 = vst [vmem:[%s221_s5] sm:$0xff] %v247_v12  ;;  %250 = vst [vmem:[%s221_s5 + $0x8] sm:$0xff] %v248_v13 }
  0x1a PF: > { %s14_s15 = sadd.s32 1, %s348_s15  }
  0x1b   : > { %p11_p4 = scmp.ge.s32.totalorder %s14_s15, 4  }
  0x1d   :  { %13 = sbr.rel (!%p11_p4) target bundleno = 1 (0x1), region = 69 }

// kernel: basic_block_forward.4
= control target key start
LH: loop header
LB: loop body
LE: loop exit
PB: predicated region body
PF: predicated region fallthrough
CT: control target
= control target key end

     0   :  { %s816_s18 = smov 0   ;;  %s943_s0 = inlined_call_operand.vmem [shape: f32[32,128], index: 0, kind: input, shape index: {}]   ;;  %s944_s1 = inlined_call_operand.vmem [shape: f32[1,128], index: 1, kind: input, shape index: {}]   ;;  %s945_s2 = inlined_call_operand.vmem [shape: f32[1,128], index: 2, kind: input, shape index: {}]   ;;  %s946_s3 = inlined_call_operand.vmem [shape: bf16[384,128], index: 3, kind: input, shape index: {}]   ;;  %s947_s4 = inlined_call_operand.vmem [shape: f32[32,128], index: 4, kind: output, shape index: {0}]   ;;  %s948_s5 = inlined_call_operand.vmem [shape: f32[8,128], index: 5, kind: output, shape index: {1}]  }
   0x1 LB: > { %s648_s19 = sadd.s32 4294967295, %s780_s18   ;;  %p652_p0 = scmp.ge.s32.totalorder %s780_s18, 1  ;;  %s780_s18 = sphi %s816_s18, %s16_s18  }
   0x2   : > { %p186_p1 = scmp.lt.s32.totalorder %s780_s18, 3 }
   0x4   : > { %p187_p2 = pnand %p652_p0, %p186_p1 }
   0x5   : > { %s653_s20 = sshll.u32 (!%p187_p2), %s648_s19, 1  ;;  %v657_v0 = vld [vmem:[%s944_s1] ss:$0 sm:$0xff] (!%p187_p2)  ;;  %p838_p4 = scmp.ne.s32.totalorder (!%p187_p2), %s648_s19, 0 }
   0x6   : > { %190 = sbr.rel (%p187_p2) target bundleno = 297 (0x129), region = 36  ;;  %p215_p3 = scmp.lt.s32.totalorder (!%p187_p2), %s653_s20, 3  ;;  %v658_v3 = vld [vmem:[%s945_s2] ss:$0 sm:$0xff] (!%p187_p2) }
   0xd   : > { %s951_s20 = smov (!%p215_p3, %s653_s20), 3  ;;  %v782_v10 = vmov (!%p838_p4), 0.0  }
   0xe   : > { %s654_s21 = sshll.u32 %s951_s20, 3  ;;  %253 = vst [vmem:[#allocation2] sm:$0x1] (!%p838_p4), %v782_v10  ;;  %254 = vst [vmem:[#allocation2 + $0x2f] sm:$0x1] (!%p838_p4), %v782_v10 }
   0xf   : > { %s218_s26 = scalar_lea.vmem %s943_s0, %s654_s21  ;;  %s833_s29 = scalar_lea.vmem %s947_s4, %s654_s21 }
  0x10   : > { %v227_v1 = vld [vmem:[%s218_s26] sm:$0xff]  ;;  %v228_v2 = vld [vmem:[%s218_s26 + $0x8] sm:$0xff]  ;;  %252 = sbr.rel (%p838_p4) target bundleno = 23 (0x17), region = 40 }
  0x11   : > { %v236_v4 = vmul.f32 %v657_v0, %v227_v1  ;;  %v237_v5 = vmul.f32 %v657_v0, %v228_v2 }
  0x13   : > { %v245_v6 = vadd.f32 %v658_v3, %v236_v4  ;;  %v246_v7 = vadd.f32 %v658_v3, %v237_v5 }
  0x15   : > { %v247_v8 = vmax.f32 %v245_v6, 0.0  ;;  %v248_v9 = vmax.f32 %v246_v7, 0.0 }
  0x17 PF: > { %v750_v11 = vld [vmem:[%s946_s3 + $0x40] sm:$0xff]   ;;  %v282_v12 = vpack.c.bf16 %v248_v9, %v247_v8  ;;  %v783_v13 = vmov 0.0   ;;  %vm259_vm0 = vcmask 1040384   ;;  %v753_v16 = vld [vmem:[%s946_s3 + $0x48] sm:$0xff]   ;;  %vm784_vm1 = vmmov 0   ;;  %v756_v21 = vld [vmem:[%s946_s3 + $0x50] sm:$0xff]  }
  0x18   : > { %718 = vmatprep.subr.bf16.mxu1 %v783_v13  ;;  %v751_v14 = vld [vmem:[%s946_s3] sm:$0xff]   ;;  %687 = vmatprep.subr.bf16.mxu0 %v750_v11  ;;  %v260_v17 = vrot.slane %v247_v8, 7  ;;  %v754_v18 = vld [vmem:[%s946_s3 + $0x8] sm:$0xff]   ;;  %v261_v19 = vrot.slane %v248_v9, 7  ;;  %vm267_vm2 = vcmask 1046528   ;;  %v268_v23 = vrot.slane %v247_v8, 1 }
  0x19   : > { %v752_v15 = vld [vmem:[%s946_s3 + $0x80] sm:$0xff]   ;;  %508 = vmatprep.mubr.bf16.mxu0 %v282_v12  ;;  %688 = vmatpush3.bf16.msra.mxu0 %v751_v14  ;;  %v755_v20 = vld [vmem:[%s946_s3 + $0x88] sm:$0xff]   ;;  %v757_v24 = vld [vmem:[%s946_s3 + $0x10] sm:$0xff]   ;;  %v269_v25 = vrot.slane %v248_v9, 1  ;;  %vm577_vm3 = vcmask 1041408  }
  0x1a   : > { %734 = vmatprep.mubr.msk.bf16.mxu1 %vm784_vm1, %v783_v13  ;;  %719 = vmatpush3.bf16.msra.mxu1 %v752_v15  ;;  %265 = vst [vmem:[#allocation2] sm:$0xfe] %v260_v17  ;;  %v262_v22 = vsel %vm259_vm0, %v260_v17, %v261_v19  ;;  %v758_v26 = vld [vmem:[%s946_s3 + $0x90] sm:$0xff]   ;;  %v759_v27 = vld [vmem:[%s946_s3 + $0x58] sm:$0xff]   ;;  %v762_v31 = vld [vmem:[%s946_s3 + $0x60] sm:$0xff]  }
  0x1b   : > { %689 = vmatprep.subr.bf16.mxu0 %v753_v16  ;;  %720 = vmatprep.subr.bf16.mxu1 %v783_v13  ;;  %v270_v28 = vsel %vm267_vm2, %v268_v23, %v269_v25  ;;  %274 = vst [vmem:[#allocation2 + $0x28] sm:$0x7f] %v269_v25  ;;  %v760_v29 = vld [vmem:[%s946_s3 + $0x18] sm:$0xff]   ;;  %v763_v32 = vld [vmem:[%s946_s3 + $0x20] sm:$0xff]   ;;  %v765_v34 = vld [vmem:[%s946_s3 + $0x68] sm:$0xff]  }
  0x1c   : > { %v761_v30 = vld [vmem:[%s946_s3 + $0x98] sm:$0xff]   ;;  %v764_v33 = vld [vmem:[%s946_s3 + $0xa0] sm:$0xff]   ;;  %v766_v35 = vld [vmem:[%s946_s3 + $0x28] sm:$0xff]  }
  0x1d   : > { %690 = vmatpush3.bf16.msra.mxu0 %v754_v18  ;;  %v767_v36 = vld [vmem:[%s946_s3 + $0xa8] sm:$0xff]   ;;  %v768_v37 = vld [vmem:[%s946_s3 + $0x70] sm:$0xff]   ;;  %v771_v40 = vld [vmem:[%s946_s3 + $0x78] sm:$0xff]  }
  0x1e   : > { %721 = vmatpush3.bf16.msra.mxu1 %v755_v20  ;;  %691 = vmatprep.subr.bf16.mxu0 %v756_v21  ;;  %v769_v38 = vld [vmem:[%s946_s3 + $0x30] sm:$0xff]   ;;  %v772_v41 = vld [vmem:[%s946_s3 + $0x38] sm:$0xff]  }
  0x1f   : > { %722 = vmatprep.subr.bf16.mxu1 %v783_v13  ;;  %v770_v39 = vld [vmem:[%s946_s3 + $0xb0] sm:$0xff]   ;;  %v773_v43 = vld [vmem:[%s946_s3 + $0xb8] sm:$0xff]  }
  0x21   : > { %692 = vmatpush3.bf16.msra.mxu0 %v757_v24  ;;  %v275_v42 = vld [vmem:[#allocation2] sm:$0xff] }
  0x22   : > { %723 = vmatpush3.bf16.msra.mxu1 %v758_v26  ;;  %693 = vmatprep.subr.bf16.mxu0 %v759_v27  ;;  %v280_v44 = vld [vmem:[#allocation2 + $0x28] sm:$0xff]  ;;  %v281_v45 = vpack.c.bf16 %v262_v22, %v275_v42 }
  0x23   : > { %724 = vmatprep.subr.bf16.mxu1 %v783_v13  ;;  %v283_v46 = vpack.c.bf16 %v280_v44, %v270_v28 }
  0x25   : > { %694 = vmatpush3.bf16.msra.mxu0 %v760_v29 }
  0x26   : > { %725 = vmatpush3.bf16.msra.mxu1 %v761_v30  ;;  %695 = vmatprep.subr.bf16.mxu0 %v762_v31 }
  0x27   : > { %726 = vmatprep.subr.bf16.mxu1 %v783_v13 }
  0x29   : > { %696 = vmatpush3.bf16.msra.mxu0 %v763_v32 }
  0x2a   : > { %727 = vmatpush3.bf16.msra.mxu1 %v764_v33  ;;  %697 = vmatprep.subr.bf16.mxu0 %v765_v34 }
  0x2b   : > { %728 = vmatprep.subr.bf16.mxu1 %v783_v13 }
  0x2d   : > { %698 = vmatpush3.bf16.msra.mxu0 %v766_v35 }
  0x2e   : > { %729 = vmatpush3.bf16.msra.mxu1 %v767_v36  ;;  %699 = vmatprep.subr.bf16.mxu0 %v768_v37 }
  0x2f   : > { %730 = vmatprep.subr.bf16.mxu1 %v783_v13 }
  0x31   : > { %700 = vmatpush3.bf16.msra.mxu0 %v769_v38 }
  0x32   : > { %731 = vmatpush3.bf16.msra.mxu1 %v770_v39  ;;  %701 = vmatprep.subr.bf16.mxu0 %v771_v40 }
  0x33   : > { %732 = vmatprep.subr.bf16.mxu1 %v783_v13  ;;  %v785_v13 = vmov (!%p838_p4), 0.0  }
  0x34   : > { %582 = vst [vmem:[%s948_s5] sm:$0xff] (!%p838_p4), %v785_v13 }
  0x35   : > { %702 = vmatpush3.bf16.msra.mxu0 %v772_v41 }
  0x36   : > { %733 = vmatpush3.bf16.msra.mxu1 %v773_v43 }
  0x38   : > { %509 = vmatmul.mubr.bf16.vlgmr.msra.gmra.mrb[0].mxu0 %v281_v45 }
  0x39   : > { %735 = vmatmul.mubr.bf16.vlgmr.msra.gmra.mrb[0].mxu1 %v283_v46 }
 0x10b   : > { %v703_v47 = vpop.f32.mrb[0].mxu0 }
 0x10c   : > { %v551_v48 = vpop.f32.mrb[0].mxu1  ;;  %v704_v49 = vpop.f32.mrb[1].mxu0 }
 0x10d   : > { %v705_v50 = vadd.f32 %v704_v49, %v703_v47  ;;  %v736_v51 = vpop.f32.mrb[1].mxu1  ;;  %v706_v52 = vpop.f32.mrb[2].mxu0 }
 0x10e   : > { %v554_v53 = vpop.f32.mrb[2].mxu1  ;;  %v707_v54 = vpop.f32.mrb[3].mxu0 }
 0x10f   : > { %v552_v55 = vadd.f32 %v705_v50, %v551_v48  ;;  %v708_v56 = vadd.f32 %v707_v54, %v706_v52  ;;  %v737_v57 = vpop.f32.mrb[3].mxu1 }
 0x111   : > { %558 = vst [vmem:[%s833_s29] sm:$0xff] %v552_v55  ;;  %v555_v58 = vadd.f32 %v708_v56, %v554_v53  ;;  %v567_v59 = vmul.f32 %v552_v55, %v552_v55 }
 0x113   : > { %559 = vst [vmem:[%s833_s29 + $0x8] sm:$0xff] %v555_v58  ;;  %v560_v60 = vadd.f32 %v555_v58, %v552_v55  ;;  %v568_v61 = vmul.f32 %v555_v58, %v555_v58 }
 0x115   : > { %v561_v62 = vrot.slane %v560_v60, 4  ;;  %v569_v63 = vadd.f32 %v568_v61, %v567_v59 }
 0x117   : > { %v562_v0 = vadd.f32 %v561_v62, %v560_v60  ;;  %v570_v1 = vrot.slane %v569_v63, 4 }
 0x119   : > { %v563_v2 = vrot.slane %v562_v0, 2  ;;  %v571_v3 = vadd.f32 %v570_v1, %v569_v63 }
 0x11b   : > { %v564_v4 = vadd.f32 %v563_v2, %v562_v0  ;;  %v572_v5 = vrot.slane %v571_v3, 2 }
 0x11d   : > { %v565_v6 = vrot.slane %v564_v4, 1  ;;  %v573_v7 = vadd.f32 %v572_v5, %v571_v3 }
 0x11e   : > { %581 = sbr.rel (%p838_p4) target bundleno = 293 (0x125), region = 44 }
 0x11f   : > { %v574_v8 = vrot.slane %v573_v7, 1  ;;  %v566_v9 = vadd.f32 %v565_v6, %v564_v4 }
 0x121   : > { %v575_v10 = vadd.f32 %v574_v8, %v573_v7 }
 0x123   : > { %v576_v11 = vsel %vm259_vm0, %v566_v9, %v575_v10 }
 0x124   : > { %v578_v12 = vsel %vm577_vm3, %v576_v11, 0.0 }
 0x125 PF: > { %v583_v14 = vld [vmem:[%s948_s5] sm:$0xff] }
 0x126   : > { %v584_v15 = vadd.f32 %v583_v14, %v578_v12 }
 0x128   : > { %585 = vst [vmem:[%s948_s5] sm:$0xff] %v584_v15 }
 0x129 PF: > { %s16_s18 = sadd.s32 1, %s780_s18  }
 0x12a   : > { %p13_p5 = scmp.ge.s32.totalorder %s16_s18, 4  }
 0x12c   :  { %15 = sbr.rel (!%p13_p5) target bundleno = 1 (0x1), region = 82 }

</bundles_post_ra>
